<compile_context>
chip_gen: v7x
topology: tpu7x:2x2x1
jax: 0.10.0
libtpu: 0.0.40
codegen_flags: <defaults>
</compile_context>

<pallas_src>
import math

import jax
import jax.numpy as jnp
from jax.experimental import pallas as pl
from jax.experimental.pallas import tpu as pltpu

_MAX_PACK = 16          # kron weight bytes scale as pack^2 * in_f * hidden -> clamp
_MAX_TILE_ROWS = 512    # packed-row tile upper bound (VMEM / pipelining sweet spot)
_SMALL_N_ROWS = 16      # below this, a fused XLA expression beats the custom call


def hyperprefix_kernel(x_ref, w1_ref, b1_ref, w2_ref, b2_ref, o_ref):
    # Layer 1: cast activations at the MXU boundary (no-op for f32 weights,
    # keeps the MXU in native bf16 mode when bf16 weights are used); f32 acc.
    x = x_ref[...].astype(w1_ref.dtype)
    h = jnp.dot(x, w1_ref[...], preferred_element_type=jnp.float32)
    h = jnp.maximum(h + b1_ref[...], 0.0)          # bias + ReLU in f32 on the VPU
    # Layer 2: cast only at the MXU input (intentionally truncates the layer-1
    # f32 accumulator when bf16 weights are used); bias-add stays in f32.
    y = jnp.dot(h.astype(w2_ref.dtype), w2_ref[...],
                preferred_element_type=jnp.float32)
    o_ref[...] = (y + b2_ref[...]).astype(o_ref.dtype)


def pack_hyperprefix_params(w1, b1, w2, b2, *, compute_dtype=None):
    """One-time (init-time) packing of the HyperPrefix weights.

    Builds block-diagonal kron(I_pack, W) weights so `pack` logical rows can be
    packed along the lane axis (lane-dense unmasked vld/vst; one dense MXU
    matmul per layer per tile).  Do NOT call this per forward pass.
    """
    in_f, hidden = w1.shape
    embed = w2.shape[1]
    if compute_dtype is None:
        compute_dtype = w1.dtype
    # Lane-packing factor so pack*in_f and pack*embed are multiples of 128.
    pack = math.lcm(128 // math.gcd(128, in_f), 128 // math.gcd(128, embed))
    use_pallas = pack <= _MAX_PACK
    params = {
        "w1": w1, "b1": b1, "w2": w2, "b2": b2,
        "in_f": in_f, "hidden": hidden, "embed": embed,
        "pack": pack, "use_pallas": use_pallas,
    }
    if use_pallas:
        eye = jnp.eye(pack, dtype=compute_dtype)
        params["w1_blk"] = jnp.kron(eye, w1.astype(compute_dtype))  # [p*in, p*hid]
        params["w2_blk"] = jnp.kron(eye, w2.astype(compute_dtype))  # [p*hid, p*emb]
        # Biases stay f32 so the bias-add happens in the f32 accumulator.
        params["b1_blk"] = jnp.tile(b1.astype(jnp.float32), pack).reshape(1, pack * hidden)
        params["b2_blk"] = jnp.tile(b2.astype(jnp.float32), pack).reshape(1, pack * embed)
    return params


def _xla_forward(x, params):
    # Plain fused XLA path: tiny batches (custom-call overhead bound) and
    # lane-unfriendly widths where the kron expansion would be huge.
    y = jnp.maximum(x @ params["w1"] + params["b1"], 0.0) @ params["w2"] + params["b2"]
    return y.astype(x.dtype)


def hyperprefix_forward(x, params, *, max_tile_rows=_MAX_TILE_ROWS):
    """HyperPrefix forward: relu(x @ w1 + b1) @ w2 + b2 for x of shape [N, in]."""
    N, in_f = x.shape
    assert in_f == params["in_f"]
    if (not params["use_pallas"]) or N <= _SMALL_N_ROWS:
        return _xla_forward(x, params)

    pack, embed = params["pack"], params["embed"]
    out_dtype = x.dtype

    # Pad only to a multiple of `pack` (needed for the lane-packing reshape);
    # Pallas itself handles the partial last row tile.
    n_pad = (-N) % pack
    if n_pad:
        x = jnp.pad(x, ((0, n_pad), (0, 0)))
    rows_packed = (N + n_pad) // pack
    x_packed = x.reshape(rows_packed, pack * in_f)          # free row-major reshape

    # Row tiling: one grid step when the whole packed batch fits; otherwise an
    # even number of <=max_tile_rows steps so v7x's two TensorCores shard the
    # "parallel" batch axis evenly (a plain sequential loop on v5e/v6e).
    if rows_packed <= max_tile_rows:
        tile_r = rows_packed            # full dim => exempt from the 8-sublane rule
    else:
        steps = pl.cdiv(rows_packed, max_tile_rows)
        if steps % 2:
            steps += 1
        tile_r = ((pl.cdiv(rows_packed, steps) + 7) // 8) * 8
    grid = (pl.cdiv(rows_packed, tile_r),)

    vmem = pltpu.MemorySpace.VMEM
    out_packed = pl.pallas_call(
        hyperprefix_kernel,
        out_shape=jax.ShapeDtypeStruct((rows_packed, pack * embed), out_dtype),
        grid_spec=pltpu.PrefetchScalarGridSpec(
            num_scalar_prefetch=0,
            grid=grid,
            in_specs=[
                # x tile marches over the packed batch axis (lane width
                # pack*in_f is a multiple of 128 -> unmasked loads).
                pl.BlockSpec((tile_r, pack * in_f), lambda i: (i, 0),
                             memory_space=vmem),
                # Weights / biases: same block every step -> DMA'd once and
                # kept resident in VMEM across the whole grid.
                pl.BlockSpec(params["w1_blk"].shape, lambda i: (0, 0), memory_space=vmem),
                pl.BlockSpec(params["b1_blk"].shape, lambda i: (0, 0), memory_space=vmem),
                pl.BlockSpec(params["w2_blk"].shape, lambda i: (0, 0), memory_space=vmem),
                pl.BlockSpec(params["b2_blk"].shape, lambda i: (0, 0), memory_space=vmem),
            ],
            # Lane-dense output: last dim pack*embed is a multiple of 128.
            out_specs=pl.BlockSpec((tile_r, pack * embed), lambda i: (i, 0),
                                   memory_space=vmem),
        ),
        compiler_params=pltpu.CompilerParams(
            dimension_semantics=("parallel",),      # batch axis shards across TCs
        ),
    )(x_packed, params["w1_blk"], params["b1_blk"],
      params["w2_blk"], params["b2_blk"])

    # Unpack: packed row r, lane-group k == logical row r*pack + k (free reshape).
    out = out_packed.reshape(rows_packed * pack, embed)
    return out[:N] if n_pad else out


def init_params(key, in_features, hidden_dim, embed_dim, dtype=jnp.float32):
    """Deterministic synthetic init (PyTorch-default-Linear-like uniform),
    stored in [in, out] weight layout; biases 1-D like nn.Linear.bias."""
    k1, k2, k3, k4 = jax.random.split(key, 4)
    bound1 = 1.0 / (in_features ** 0.5)
    bound2 = 1.0 / (hidden_dim ** 0.5)
    w1 = jax.random.uniform(k1, (in_features, hidden_dim), dtype, -bound1, bound1)
    b1 = jax.random.uniform(k2, (hidden_dim,), dtype, -bound1, bound1)
    w2 = jax.random.uniform(k3, (hidden_dim, embed_dim), dtype, -bound2, bound2)
    b2 = jax.random.uniform(k4, (embed_dim,), dtype, -bound2, bound2)
    return w1, b1, w2, b2


if __name__ == "__main__":
    # Module hyperparameters (consistent with the PyTorch HyperPrefix):
    t_embeddings = 8
    l_embeddings = 8
    embed_dim = 32
    bottleneck_factor = 4
    hidden_dim = embed_dim // bottleneck_factor   # = 8
    in_features = t_embeddings + l_embeddings     # = 16

    key = jax.random.PRNGKey(0)
    kx, kp, kx2 = jax.random.split(key, 3)
    w1, b1, w2, b2 = init_params(kp, in_features, hidden_dim, embed_dim)

    def ref_fn(x):
        return jnp.maximum(x @ w1 + b1, 0.0) @ w2 + b2

    # One-time (hoisted) weight packing - NOT per forward call.
    params_f32 = pack_hyperprefix_params(w1, b1, w2, b2)

    # 1) Typical per-call batch (N=2): dispatches to the fused XLA fast path.
    x_small = jax.random.normal(kx, (2, in_features), jnp.float32)
    out_small = jax.block_until_ready(hyperprefix_forward(x_small, params_f32))
    assert out_small.shape == (2, embed_dim)
    assert jnp.allclose(out_small, ref_fn(x_small), atol=1e-5, rtol=1e-5)

    # 2) Stacked all-layer/all-task batch: single-tile Pallas kernel with
    #    resident weights and lane-packed I/O.
    x_big = jax.random.normal(kx2, (1000, in_features), jnp.float32)
    out_big = jax.block_until_ready(hyperprefix_forward(x_big, params_f32))
    assert out_big.shape == (1000, embed_dim)
    assert jnp.allclose(out_big, ref_fn(x_big), atol=1e-5, rtol=1e-5)

    # 3) Force a multi-step grid with a partial last tile (exercises the
    #    even-step "parallel" sharding path used for very large batches).
    out_multi = jax.block_until_ready(
        hyperprefix_forward(x_big, params_f32, max_tile_rows=64))
    assert jnp.allclose(out_multi, ref_fn(x_big), atol=1e-5, rtol=1e-5)

    # 4) bf16-weight variant (halves resident weight VMEM and weight DMA
    #    bytes); f32 accumulation keeps the error at bf16-rounding level.
    params_bf16 = pack_hyperprefix_params(w1, b1, w2, b2, compute_dtype=jnp.bfloat16)
    out_bf16 = jax.block_until_ready(hyperprefix_forward(x_big, params_bf16))
    assert out_bf16.shape == (1000, embed_dim)
    assert jnp.allclose(out_bf16, ref_fn(x_big), atol=1e-1, rtol=1e-1)

    print("KERNEL_OK")
</pallas_src>

<mosaic_0001>
module attributes {stable_mosaic.version = 11 : i64} {
  func.func @hyperprefix_kernel(%arg0: i32, %arg1: memref<125x128xf32, #tpu.memory_space<vmem>>, %arg2: memref<128x64xf32, #tpu.memory_space<vmem>>, %arg3: memref<1x64xf32, #tpu.memory_space<vmem>>, %arg4: memref<64x256xf32, #tpu.memory_space<vmem>>, %arg5: memref<1x256xf32, #tpu.memory_space<vmem>>, %arg6: memref<125x256xf32, #tpu.memory_space<vmem>>) attributes {dimension_semantics = [#tpu.dimension_semantics<parallel>], iteration_bounds = array<i64: 1>, scalar_prefetch = 0 : i64, scratch_operands = 0 : i64, tpu.core_type = #tpu.core_type<tc>, window_params = [{transform_indices = @transform_0, window_bounds = array<i64: 125, 128>}, {pipeline_mode = #tpu.pipeline_mode<synchronous>, transform_indices = @transform_1, window_bounds = array<i64: 128, 64>}, {pipeline_mode = #tpu.pipeline_mode<synchronous>, transform_indices = @transform_2, window_bounds = array<i64: 1, 64>}, {pipeline_mode = #tpu.pipeline_mode<synchronous>, transform_indices = @transform_3, window_bounds = array<i64: 64, 256>}, {pipeline_mode = #tpu.pipeline_mode<synchronous>, transform_indices = @transform_4, window_bounds = array<i64: 1, 256>}, {transform_indices = @transform_5, window_bounds = array<i64: 125, 256>}]} {
    %c0 = arith.constant 0 : index
    %c0_0 = arith.constant 0 : index
    %0 = vector.load %arg1[%c0, %c0_0] : memref<125x128xf32, #tpu.memory_space<vmem>>, vector<125x128xf32>
    %c0_1 = arith.constant 0 : index
    %c0_2 = arith.constant 0 : index
    %1 = vector.load %arg2[%c0_1, %c0_2] : memref<128x64xf32, #tpu.memory_space<vmem>>, vector<128x64xf32>
    %cst = arith.constant dense<0.000000e+00> : vector<125x64xf32>
    %2 = tpu.matmul %0, %1, %cst {dimension_numbers = #tpu.dot_dimension_numbers<[1], [0], [0], [1], [0, 0, 1, 1], [], []>} : vector<125x128xf32>, vector<128x64xf32>, vector<125x64xf32> -> vector<125x64xf32>
    %c0_3 = arith.constant 0 : index
    %c0_4 = arith.constant 0 : index
    %3 = vector.load %arg3[%c0_3, %c0_4] : memref<1x64xf32, #tpu.memory_space<vmem>>, vector<1x64xf32>
    %4 = vector.broadcast %3 : vector<1x64xf32> to vector<125x64xf32>
    %5 = arith.addf %2, %4 : vector<125x64xf32>
    %cst_5 = arith.constant 0.000000e+00 : f32
    %6 = vector.broadcast %cst_5 : f32 to vector<125x64xf32>
    %7 = arith.maximumf %5, %6 : vector<125x64xf32>
    %c0_6 = arith.constant 0 : index
    %c0_7 = arith.constant 0 : index
    %8 = vector.load %arg4[%c0_6, %c0_7] : memref<64x256xf32, #tpu.memory_space<vmem>>, vector<64x256xf32>
    %cst_8 = arith.constant dense<0.000000e+00> : vector<125x256xf32>
    %9 = tpu.matmul %7, %8, %cst_8 {dimension_numbers = #tpu.dot_dimension_numbers<[1], [0], [0], [1], [0, 0, 1, 1], [], []>} : vector<125x64xf32>, vector<64x256xf32>, vector<125x256xf32> -> vector<125x256xf32>
    %c0_9 = arith.constant 0 : index
    %c0_10 = arith.constant 0 : index
    %10 = vector.load %arg5[%c0_9, %c0_10] : memref<1x256xf32, #tpu.memory_space<vmem>>, vector<1x256xf32>
    %11 = vector.broadcast %10 : vector<1x256xf32> to vector<125x256xf32>
    %12 = arith.addf %9, %11 : vector<125x256xf32>
    %c0_11 = arith.constant 0 : index
    %c0_12 = arith.constant 0 : index
    %13 = vector.load %arg6[%c0_11, %c0_12] : memref<125x256xf32, #tpu.memory_space<vmem>>, vector<125x256xf32>
    tpu.vector_store %arg6[%c0_11, %c0_12], %12 {strides = array<i32>} : memref<125x256xf32, #tpu.memory_space<vmem>>, vector<125x256xf32>,
    return
  }
  func.func @transform_0(%arg0: i32) -> (i32, i32) {
    %c0_i32 = arith.constant 0 : i32
    %c0_i32_0 = arith.constant 0 : i32
    return %arg0, %c0_i32 : i32, i32
  }
  func.func @transform_1(%arg0: i32) -> (i32, i32) {
    %c0_i32 = arith.constant 0 : i32
    %c0_i32_0 = arith.constant 0 : i32
    %c0_i32_1 = arith.constant 0 : i32
    return %c0_i32, %c0_i32_0 : i32, i32
  }
  func.func @transform_2(%arg0: i32) -> (i32, i32) {
    %c0_i32 = arith.constant 0 : i32
    %c0_i32_0 = arith.constant 0 : i32
    %c0_i32_1 = arith.constant 0 : i32
    return %c0_i32, %c0_i32_0 : i32, i32
  }
  func.func @transform_3(%arg0: i32) -> (i32, i32) {
    %c0_i32 = arith.constant 0 : i32
    %c0_i32_0 = arith.constant 0 : i32
    %c0_i32_1 = arith.constant 0 : i32
    return %c0_i32, %c0_i32_0 : i32, i32
  }
  func.func @transform_4(%arg0: i32) -> (i32, i32) {
    %c0_i32 = arith.constant 0 : i32
    %c0_i32_0 = arith.constant 0 : i32
    %c0_i32_1 = arith.constant 0 : i32
    return %c0_i32, %c0_i32_0 : i32, i32
  }
  func.func @transform_5(%arg0: i32) -> (i32, i32) {
    %c0_i32 = arith.constant 0 : i32
    %c0_i32_0 = arith.constant 0 : i32
    return %arg0, %c0_i32 : i32, i32
  }
}

</mosaic_0001>

<bundles_post_ra>
// kernel: tpu_custom_call.1
= control target key start
LH: loop header
LB: loop body
LE: loop exit
PB: predicated region body
PF: predicated region fallthrough
CT: control target
= control target key end

     0   :  { %10 = vsyncpa [#allocation3], 0  ;;  %s989_s0 = inlined_call_operand.vmem [shape: f32[125,128], index: 0, kind: input, shape index: {}]   ;;  %s990_s1 = inlined_call_operand.vmem [shape: f32[128,64], index: 1, kind: input, shape index: {}]   ;;  %s991_s2 = inlined_call_operand.vmem [shape: f32[1,64], index: 2, kind: input, shape index: {}]   ;;  %s992_s3 = inlined_call_operand.hbm [shape: f32[64,256], index: 3, kind: input, shape index: {}]   ;;  %s993_s4 = inlined_call_operand.vmem [shape: f32[1,256], index: 4, kind: input, shape index: {}]   ;;  %s994_s5 = inlined_call_operand.hbm [shape: f32[125,256], index: 5, kind: output, shape index: {}]  }
   0x1   :  { %11 = vsyncpa [#allocation4], 0  ;;  %s736_s18 = smov [#allocation2]   ;;  %s688_s22 = scalar_lea.hbm %s992_s3, 2048 }
   0x2   :  { %s23_s19 = sshll.u32 %s736_s18, 4  ;;  %p689_p0 = scmp.ne.s32.totalorder %s992_s3, %s688_s22  ;;  %s24_s19 = int_to_ptr.vmem [resolvable:$true] %s23_s19 }
   0x3   :  { %p692_p1 = scmp.lt.u32.totalorder %s688_s22, %s992_s3 }
   0x5   :  { %p694_p2 = pnand %p692_p1, %p689_p0 }
   0x7   :  { %697 = shalt.err (!%p694_p2)
}
   0x8   :  { %s698_s27 = scalar_lea.vmem %s24_s19, 2048  ;;  %p703_p4 = scmp.lt.s32.totalorder %s24_s19, %s24_s19 }
   0x9   :  { %p699_p3 = scmp.ne.s32.totalorder %s24_s19, %s698_s27  ;;  %p704_p5 = scmp.lt.s32.totalorder %s698_s27, %s698_s27 }
   0xb   :  { %p705_p6 = por %p704_p5, %p703_p4 }
   0xd   :  { %p706_p7 = pnand %p705_p6, %p699_p3 }
   0xf   :  { %709 = shalt.err (!%p706_p7)
}
  0x10   :  { %s737_s28 = smov 256   ;;  %s738_s29 = smov 16  }
  0x11   :  { %29 = dma.hbm_to_vmem [thread:$0]  %s992_s3, 2048, %s24_s19, [#allocation3], %s737_s28, %s737_s28, %s738_s29  }
  0x12   :  { %732 = dma.done.wait [#allocation3], 2048  }
  0x13   :  { %733 = vsyncadd [#allocation3], 4294965248  ;;  %v51_v0 = vld [vmem:[%s990_s1] sm:$0xff]  ;;  %v52_v1 = vld [vmem:[%s990_s1 + $0x8] sm:$0xff]  ;;  %vm263_vm0 = vcmask 523264  }
  0x14   :  { %v53_v2 = vld [vmem:[%s990_s1 + $0x10] sm:$0xff]  ;;  %v627_v3 = vpack.c.bf16 %v52_v1, %v51_v0  ;;  %v54_v4 = vld [vmem:[%s990_s1 + $0x18] sm:$0xff]  ;;  %v55_v6 = vld [vmem:[%s990_s1 + $0x20] sm:$0xff]  ;;  %v739_v0 = vmov 0.0  }
  0x15   :  { %v631_v5 = vpack.c.bf16 %v54_v4, %v53_v2  ;;  %v56_v7 = vld [vmem:[%s990_s1 + $0x28] sm:$0xff]  ;;  %v35_v9 = vld [vmem:[%s989_s0] sm:$0xff]  ;;  %v57_v10 = vld [vmem:[%s990_s1 + $0x30] sm:$0xff]  ;;  %388 = vmatprep.mubr.f32.mxu1 %v739_v0 }
  0x16   :  { %628 = vmatprep.subr.bf16.mxu0 %v627_v3  ;;  %v635_v8 = vpack.c.bf16 %v56_v7, %v55_v6  ;;  %v58_v11 = vld [vmem:[%s990_s1 + $0x38] sm:$0xff]  ;;  %603 = vmatprep.mubr.f32.mxu0 %v35_v9  ;;  %v59_v13 = vld [vmem:[%s990_s1 + $0x40] sm:$0xff]  ;;  %v60_v14 = vld [vmem:[%s990_s1 + $0x48] sm:$0xff] }
  0x17   :  { %630 = vmatpush3.bf16.msra.mxu0 %v627_v3  ;;  %v639_v12 = vpack.c.bf16 %v58_v11, %v57_v10  ;;  %v236_v15 = vld [vmem:[#allocation2 + $0x8] sm:$0xff]  ;;  %v238_v16 = vld [vmem:[#allocation2 + $0x18] sm:$0xff]  ;;  %v235_v17 = vld [vmem:[#allocation2] sm:$0xff]  ;;  %v643_v22 = vpack.c.bf16 %v60_v14, %v59_v13 }
  0x18   :  { %632 = vmatprep.subr.bf16.mxu0 %v631_v5  ;;  %v237_v18 = vld [vmem:[#allocation2 + $0x10] sm:$0xff]  ;;  %v659_v19 = vpack.c.bf16 %v238_v16, %v236_v15  ;;  %v240_v20 = vld [vmem:[#allocation2 + $0x28] sm:$0xff]  ;;  %v242_v21 = vld [vmem:[#allocation2 + $0x38] sm:$0xff] }
  0x19   :  { %v61_v23 = vld [vmem:[%s990_s1 + $0x50] sm:$0xff]  ;;  %v661_v24 = vpack.c.bf16 %v237_v18, %v235_v17  ;;  %v62_v25 = vld [vmem:[%s990_s1 + $0x58] sm:$0xff]  ;;  %v663_v26 = vpack.c.bf16 %v242_v21, %v240_v20  ;;  %v239_v27 = vld [vmem:[#allocation2 + $0x20] sm:$0xff] }
  0x1a   :  { %675 = vmatprep.subr.bf16.mxu1 %v659_v19  ;;  %v241_v28 = vld [vmem:[#allocation2 + $0x30] sm:$0xff]  ;;  %v244_v29 = vld [vmem:[#allocation2 + $0x48] sm:$0xff]  ;;  %v246_v30 = vld [vmem:[#allocation2 + $0x58] sm:$0xff]  ;;  %v647_v31 = vpack.c.bf16 %v62_v25, %v61_v23 }
  0x1b   :  { %634 = vmatpush3.bf16.msra.mxu0 %v631_v5  ;;  %679 = vmatpush1.bf16.msra.mxu1 %v661_v24  ;;  %v63_v32 = vld [vmem:[%s990_s1 + $0x60] sm:$0xff]  ;;  %v665_v33 = vpack.c.bf16 %v241_v28, %v239_v27  ;;  %v64_v34 = vld [vmem:[%s990_s1 + $0x68] sm:$0xff]  ;;  %v667_v35 = vpack.c.bf16 %v246_v30, %v244_v29  ;;  %v245_v37 = vld [vmem:[#allocation2 + $0x50] sm:$0xff] }
  0x1c   :  { %636 = vmatprep.subr.bf16.mxu0 %v635_v8  ;;  %676 = vmatprep.subr.bf16.mxu1 %v663_v26  ;;  %v243_v36 = vld [vmem:[#allocation2 + $0x40] sm:$0xff]  ;;  %v651_v38 = vpack.c.bf16 %v64_v34, %v63_v32  ;;  %v65_v40 = vld [vmem:[%s990_s1 + $0x70] sm:$0xff]  ;;  %v66_v41 = vld [vmem:[%s990_s1 + $0x78] sm:$0xff] }
  0x1d   :  { %v669_v39 = vpack.c.bf16 %v245_v37, %v243_v36  ;;  %v655_v42 = vpack.c.bf16 %v66_v41, %v65_v40  ;;  %v36_v43 = vld [vmem:[%s989_s0 + $0x8] sm:$0xff]  ;;  %v37_v44 = vld [vmem:[%s989_s0 + $0x10] sm:$0xff]  ;;  %v38_v45 = vld [vmem:[%s989_s0 + $0x18] sm:$0xff] }
  0x1e   :  { %v39_v46 = vld [vmem:[%s989_s0 + $0x20] sm:$0xff]  ;;  %v40_v47 = vld [vmem:[%s989_s0 + $0x28] sm:$0xff]  ;;  %v41_v48 = vld [vmem:[%s989_s0 + $0x30] sm:$0xff] }
  0x1f   :  { %638 = vmatpush3.bf16.msra.mxu0 %v635_v8  ;;  %680 = vmatpush1.bf16.msra.mxu1 %v665_v33  ;;  %v42_v49 = vld [vmem:[%s989_s0 + $0x38] sm:$0xff]  ;;  %v43_v50 = vld [vmem:[%s989_s0 + $0x40] sm:$0xff]  ;;  %v44_v51 = vld [vmem:[%s989_s0 + $0x48] sm:$0xff] }
  0x20   :  { %640 = vmatprep.subr.bf16.mxu0 %v639_v12  ;;  %677 = vmatprep.subr.bf16.mxu1 %v667_v35  ;;  %v45_v52 = vld [vmem:[%s989_s0 + $0x50] sm:$0xff]  ;;  %v46_v53 = vld [vmem:[%s989_s0 + $0x58] sm:$0xff]  ;;  %v47_v54 = vld [vmem:[%s989_s0 + $0x60] sm:$0xff] }
  0x21   :  { %v48_v55 = vld [vmem:[%s989_s0 + $0x68] sm:$0xff]  ;;  %v49_v56 = vld [vmem:[%s989_s0 + $0x70] sm:$0xff]  ;;  %v50_v57 = vld [vmem:[%s989_s0 + $0x78] sm:$0x1f] }
  0x22   :  { %v248_v58 = vld [vmem:[#allocation2 + $0x68] sm:$0xff]  ;;  %v250_v59 = vld [vmem:[#allocation2 + $0x78] sm:$0xff]  ;;  %v247_v61 = vld [vmem:[#allocation2 + $0x60] sm:$0xff] }
  0x23   :  { %642 = vmatpush3.bf16.msra.mxu0 %v639_v12  ;;  %681 = vmatpush1.bf16.msra.mxu1 %v669_v39  ;;  %v671_v60 = vpack.c.bf16 %v250_v59, %v248_v58  ;;  %v249_v62 = vld [vmem:[#allocation2 + $0x70] sm:$0xff]  ;;  %v887_v1 = vld [vmem:[%s991_s2] ss:$0 sm:$0xff] }
  0x24   :  { %644 = vmatprep.subr.bf16.mxu0 %v643_v22  ;;  %v673_v63 = vpack.c.bf16 %v249_v62, %v247_v61 }
  0x25   :  { %678 = vmatprep.subr.bf16.mxu1 %v671_v60 }
  0x27   :  { %646 = vmatpush3.bf16.msra.mxu0 %v643_v22  ;;  %682 = vmatpush1.bf16.msra.mxu1 %v673_v63 }
  0x28   :  { %648 = vmatprep.subr.bf16.mxu0 %v647_v31 }
  0x2b   :  { %650 = vmatpush3.bf16.msra.mxu0 %v647_v31 }
  0x2c   :  { %652 = vmatprep.subr.bf16.mxu0 %v651_v38 }
  0x2f   :  { %654 = vmatpush3.bf16.msra.mxu0 %v651_v38 }
  0x30   :  { %656 = vmatprep.subr.bf16.mxu0 %v655_v42 }
  0x33   :  { %658 = vmatpush3.bf16.msra.mxu0 %v655_v42 }
  0x34   :  { %660 = vmatprep.subr.bf16.mxu0 %v659_v19 }
  0x36   :  { %604 = vmatmul.mubr.f32.vlgmr.msra.gmra.mrb[0].mxu0 %v36_v43 }
  0x37   :  { %606 = vmatprep.mubr.f32.mxu0 %v37_v44  ;;  %662 = vmatpush1.bf16.msra.mxu0 %v661_v24 }
  0x38   :  { %664 = vmatprep.subr.bf16.mxu0 %v663_v26 }
  0x3a   :  { %607 = vmatmul.mubr.f32.gmra.mrb[2].mxu0 %v38_v45 }
  0x3b   :  { %609 = vmatprep.mubr.f32.mxu0 %v39_v46  ;;  %666 = vmatpush1.bf16.msra.mxu0 %v665_v33 }
  0x3c   :  { %668 = vmatprep.subr.bf16.mxu0 %v667_v35 }
  0x3e   :  { %610 = vmatmul.mubr.f32.gmra.mrb[4].mxu0 %v40_v47 }
  0x3f   :  { %612 = vmatprep.mubr.f32.mxu0 %v41_v48  ;;  %670 = vmatpush1.bf16.msra.mxu0 %v669_v39 }
  0x40   :  { %672 = vmatprep.subr.bf16.mxu0 %v671_v60 }
  0x42   :  { %613 = vmatmul.mubr.f32.gmra.mrb[6].mxu0 %v42_v49 }
  0x43   :  { %615 = vmatprep.mubr.f32.mxu0 %v43_v50  ;;  %674 = vmatpush1.bf16.msra.mxu0 %v673_v63  ;;  %v253_v50 = vlaneseq }
  0x46   :  { %616 = vmatmul.mubr.f32.gmra.mrb[8].mxu0 %v44_v51  ;;  %v254_v51 = vshrl.u32 %v253_v50, 7 }
  0x47   :  { %618 = vmatprep.mubr.f32.mxu0 %v45_v52 }
  0x48   :  { %v255_v52 = vsub.s32 0, %v254_v51 }
  0x4a   :  { %619 = vmatmul.mubr.f32.gmra.mrb[10].mxu0 %v46_v53  ;;  %v251_v53 = vld [vmem:[%s993_s4] sm:$0x3]  ;;  %s740_s4 = smov [#allocation5]  }
  0x4b   :  { %621 = vmatprep.mubr.f32.mxu0 %v47_v54  ;;  %v259_v54 = vsub.s32 1, %v254_v51  ;;  %s510_s22 = sshll.u32 %s740_s4, 4  ;;  %s511_s22 = int_to_ptr.vmem [resolvable:$true] %s510_s22 }
  0x4c   :  { %s710_s23 = scalar_lea.vmem %s511_s22, 4096  ;;  %p715_p9 = scmp.lt.s32.totalorder %s511_s22, %s511_s22 }
  0x4d   :  { %p711_p8 = scmp.ne.s32.totalorder %s511_s22, %s710_s23  ;;  %p716_p10 = scmp.lt.s32.totalorder %s710_s23, %s710_s23 }
  0x4e   :  { %622 = vmatmul.mubr.f32.gmra.mrb[12].mxu0 %v48_v55  ;;  %v938_v55 = vrot.slane %v251_v53, %v255_v52 }
  0x4f   :  { %624 = vmatprep.mubr.f32.mxu0 %v49_v56  ;;  %v940_v56 = vrot.slane %v251_v53, %v259_v54  ;;  %p717_p11 = por %p716_p10, %p715_p9 }
  0x51   :  { %p718_p12 = pnand %p717_p11, %p711_p8 }
  0x52   :  { %625 = vmatmul.mubr.f32.gmra.mrb[14].mxu0 %v50_v57 }
  0x53   :  { %376 = vmatprep.mubr.f32.mxu0 %v739_v0 }
 0x109   :  { %v605_v2 = vpop.f32.mrb[0].mxu0 }
 0x10a   :  { %v140_v3 = vpop.f32.mrb[1].mxu0  ;;  %v146_v5 = vadd.f32 %v605_v2, %v887_v1 }
 0x10b   :  { %v141_v4 = vadd.f32 %v887_v1, %v140_v3 }
 0x10c   :  { %v220_v10 = vmax.f32 %v146_v5, 0.0 }
 0x10d   :  { %v219_v6 = vmax.f32 %v141_v4, 0.0  ;;  %v608_v7 = vpop.f32.mrb[2].mxu0 }
 0x10e   :  { %v150_v8 = vpop.f32.mrb[3].mxu0  ;;  %v156_v11 = vadd.f32 %v608_v7, %v887_v1 }
 0x10f   :  { %v151_v9 = vadd.f32 %v887_v1, %v150_v8  ;;  %523 = vmatmul.mubr.msk.f32.vlgmr.msra.gmra.mrb[16].mxu0 %vm263_vm0, %v219_v6 }
 0x110   :  { %382 = vmatprep.mubr.f32.mxu0 %v739_v0  ;;  %v222_v16 = vmax.f32 %v156_v11, 0.0 }
 0x111   :  { %v221_v12 = vmax.f32 %v151_v9, 0.0  ;;  %v611_v13 = vpop.f32.mrb[4].mxu0 }
 0x112   :  { %v160_v14 = vpop.f32.mrb[5].mxu0  ;;  %v166_v20 = vadd.f32 %v611_v13, %v887_v1 }
 0x113   :  { %524 = vmatmul.mubr.msk.f32.gmra.mrb[18].mxu0 %vm263_vm0, %v220_v10  ;;  %525 = vmatmul.mubr.msk.f32.vlgmr.msra.gmra.mrb[0].mxu1 %vm263_vm0, %v221_v12  ;;  %v161_v15 = vadd.f32 %v887_v1, %v160_v14 }
 0x114   :  { %394 = vmatprep.mubr.f32.mxu1 %v739_v0  ;;  %v224_v24 = vmax.f32 %v166_v20, 0.0 }
 0x115   :  { %v614_v17 = vpop.f32.mrb[6].mxu0  ;;  %v223_v19 = vmax.f32 %v161_v15, 0.0 }
 0x116   :  { %v170_v18 = vpop.f32.mrb[7].mxu0  ;;  %v176_v28 = vadd.f32 %v614_v17, %v887_v1 }
 0x117   :  { %526 = vmatmul.mubr.msk.f32.gmra.mrb[2].mxu1 %vm263_vm0, %v222_v16  ;;  %v171_v23 = vadd.f32 %v887_v1, %v170_v18 }
 0x118   :  { %400 = vmatprep.mubr.f32.mxu1 %v739_v0  ;;  %v226_v32 = vmax.f32 %v176_v28, 0.0 }
 0x119   :  { %v617_v21 = vpop.f32.mrb[8].mxu0  ;;  %v225_v27 = vmax.f32 %v171_v23, 0.0 }
 0x11a   :  { %v180_v22 = vpop.f32.mrb[9].mxu0  ;;  %v186_v36 = vadd.f32 %v617_v21, %v887_v1 }
 0x11b   :  { %527 = vmatmul.mubr.msk.f32.gmra.mrb[4].mxu1 %vm263_vm0, %v223_v19  ;;  %v181_v31 = vadd.f32 %v887_v1, %v180_v22 }
 0x11c   :  { %406 = vmatprep.mubr.f32.mxu1 %v739_v0  ;;  %v228_v38 = vmax.f32 %v186_v36, 0.0 }
 0x11d   :  { %v620_v25 = vpop.f32.mrb[10].mxu0  ;;  %v227_v35 = vmax.f32 %v181_v31, 0.0 }
 0x11e   :  { %v190_v26 = vpop.f32.mrb[11].mxu0  ;;  %v196_v40 = vadd.f32 %v620_v25, %v887_v1 }
 0x11f   :  { %528 = vmatmul.mubr.msk.f32.gmra.mrb[6].mxu1 %vm263_vm0, %v224_v24  ;;  %v191_v37 = vadd.f32 %v887_v1, %v190_v26 }
 0x120   :  { %412 = vmatprep.mubr.f32.mxu1 %v739_v0  ;;  %v230_v42 = vmax.f32 %v196_v40, 0.0 }
 0x121   :  { %v623_v29 = vpop.f32.mrb[12].mxu0  ;;  %v229_v39 = vmax.f32 %v191_v37, 0.0 }
 0x122   :  { %v200_v30 = vpop.f32.mrb[13].mxu0  ;;  %v206_v44 = vadd.f32 %v623_v29, %v887_v1 }
 0x123   :  { %529 = vmatmul.mubr.msk.f32.gmra.mrb[8].mxu1 %vm263_vm0, %v225_v27  ;;  %v201_v41 = vadd.f32 %v887_v1, %v200_v30 }
 0x124   :  { %418 = vmatprep.mubr.f32.mxu1 %v739_v0  ;;  %v232_v46 = vmax.f32 %v206_v44, 0.0 }
 0x125   :  { %v626_v33 = vpop.f32.mrb[14].mxu0  ;;  %v231_v43 = vmax.f32 %v201_v41, 0.0 }
 0x126   :  { %v210_v34 = vpop.f32.mrb[15].mxu0  ;;  %v216_v48 = vadd.f32 %v626_v33, %v887_v1 }
 0x127   :  { %530 = vmatmul.mubr.msk.f32.gmra.mrb[10].mxu1 %vm263_vm0, %v226_v32  ;;  %v211_v45 = vadd.f32 %v887_v1, %v210_v34 }
 0x128   :  { %424 = vmatprep.mubr.f32.mxu1 %v739_v0  ;;  %v234_v49 = vmax.f32 %v216_v48, 0.0 }
 0x129   :  { %v233_v47 = vmax.f32 %v211_v45, 0.0 }
 0x12b   :  { %531 = vmatmul.mubr.msk.f32.gmra.mrb[12].mxu1 %vm263_vm0, %v227_v35 }
 0x12c   :  { %430 = vmatprep.mubr.f32.mxu1 %v739_v0 }
 0x12f   :  { %532 = vmatmul.mubr.msk.f32.gmra.mrb[14].mxu1 %vm263_vm0, %v228_v38 }
 0x130   :  { %436 = vmatprep.mubr.f32.mxu1 %v739_v0 }
 0x133   :  { %533 = vmatmul.mubr.msk.f32.gmra.mrb[16].mxu1 %vm263_vm0, %v229_v39 }
 0x134   :  { %442 = vmatprep.mubr.f32.mxu1 %v739_v0 }
 0x137   :  { %534 = vmatmul.mubr.msk.f32.gmra.mrb[18].mxu1 %vm263_vm0, %v230_v42 }
 0x138   :  { %448 = vmatprep.mubr.f32.mxu1 %v739_v0 }
 0x13b   :  { %535 = vmatmul.mubr.msk.f32.gmra.mrb[20].mxu1 %vm263_vm0, %v231_v43 }
 0x13c   :  { %454 = vmatprep.mubr.f32.mxu1 %v739_v0 }
 0x13f   :  { %536 = vmatmul.mubr.msk.f32.gmra.mrb[22].mxu1 %vm263_vm0, %v232_v46 }
 0x140   :  { %460 = vmatprep.mubr.f32.mxu1 %v739_v0 }
 0x143   :  { %537 = vmatmul.mubr.msk.f32.gmra.mrb[24].mxu1 %vm263_vm0, %v233_v47 }
 0x144   :  { %466 = vmatprep.mubr.f32.mxu1 %v739_v0 }
 0x147   :  { %538 = vmatmul.mubr.msk.f32.gmra.mrb[26].mxu1 %vm263_vm0, %v234_v49 }
 0x1e2   :  { %v378_v57 = vpop.f32.mrb[16].mxu0 }
 0x1e3   :  { %v379_v58 = vadd.f32 %v378_v57, %v938_v55  ;;  %v380_v59 = vpop.f32.mrb[17].mxu0 }
 0x1e4   :  { %v381_v60 = vadd.f32 %v380_v59, %v940_v56 }
 0x1e5   :  { %473 = vst [vmem:[#allocation5] sm:$0xff] %v379_v58 }
 0x1e6   :  { %474 = vst [vmem:[#allocation5 + $0x8] sm:$0xff] %v381_v60  ;;  %v384_v61 = vpop.f32.mrb[18].mxu0  ;;  %v390_v62 = vpop.f32.mrb[0].mxu1 }
 0x1e7   :  { %v385_v63 = vadd.f32 %v384_v61, %v938_v55  ;;  %v391_v0 = vadd.f32 %v390_v62, %v938_v55  ;;  %v386_v1 = vpop.f32.mrb[19].mxu0  ;;  %v392_v2 = vpop.f32.mrb[1].mxu1 }
 0x1e8   :  { %v387_v3 = vadd.f32 %v386_v1, %v940_v56  ;;  %v393_v4 = vadd.f32 %v392_v2, %v940_v56 }
 0x1e9   :  { %475 = vst [vmem:[#allocation5 + $0x10] sm:$0xff] %v385_v63  ;;  %477 = vst [vmem:[#allocation5 + $0x20] sm:$0xff] %v391_v0 }
 0x1ea   :  { %476 = vst [vmem:[#allocation5 + $0x18] sm:$0xff] %v387_v3  ;;  %478 = vst [vmem:[#allocation5 + $0x28] sm:$0xff] %v393_v4  ;;  %v396_v5 = vpop.f32.mrb[2].mxu1 }
 0x1eb   :  { %v397_v6 = vadd.f32 %v396_v5, %v938_v55  ;;  %v398_v7 = vpop.f32.mrb[3].mxu1 }
 0x1ec   :  { %v399_v8 = vadd.f32 %v398_v7, %v940_v56 }
 0x1ed   :  { %479 = vst [vmem:[#allocation5 + $0x30] sm:$0xff] %v397_v6 }
 0x1ee   :  { %480 = vst [vmem:[#allocation5 + $0x38] sm:$0xff] %v399_v8  ;;  %v402_v9 = vpop.f32.mrb[4].mxu1 }
 0x1ef   :  { %v403_v10 = vadd.f32 %v402_v9, %v938_v55  ;;  %v404_v11 = vpop.f32.mrb[5].mxu1 }
 0x1f0   :  { %v405_v12 = vadd.f32 %v404_v11, %v940_v56 }
 0x1f1   :  { %481 = vst [vmem:[#allocation5 + $0x40] sm:$0xff] %v403_v10 }
 0x1f2   :  { %482 = vst [vmem:[#allocation5 + $0x48] sm:$0xff] %v405_v12  ;;  %v408_v13 = vpop.f32.mrb[6].mxu1 }
 0x1f3   :  { %v409_v14 = vadd.f32 %v408_v13, %v938_v55  ;;  %v410_v15 = vpop.f32.mrb[7].mxu1 }
 0x1f4   :  { %v411_v16 = vadd.f32 %v410_v15, %v940_v56 }
 0x1f5   :  { %483 = vst [vmem:[#allocation5 + $0x50] sm:$0xff] %v409_v14 }
 0x1f6   :  { %484 = vst [vmem:[#allocation5 + $0x58] sm:$0xff] %v411_v16  ;;  %v414_v17 = vpop.f32.mrb[8].mxu1 }
 0x1f7   :  { %v415_v18 = vadd.f32 %v414_v17, %v938_v55  ;;  %v416_v19 = vpop.f32.mrb[9].mxu1 }
 0x1f8   :  { %v417_v20 = vadd.f32 %v416_v19, %v940_v56 }
 0x1f9   :  { %485 = vst [vmem:[#allocation5 + $0x60] sm:$0xff] %v415_v18 }
 0x1fa   :  { %486 = vst [vmem:[#allocation5 + $0x68] sm:$0xff] %v417_v20  ;;  %v420_v21 = vpop.f32.mrb[10].mxu1 }
 0x1fb   :  { %v421_v22 = vadd.f32 %v420_v21, %v938_v55  ;;  %v422_v23 = vpop.f32.mrb[11].mxu1 }
 0x1fc   :  { %v423_v24 = vadd.f32 %v422_v23, %v940_v56 }
 0x1fd   :  { %487 = vst [vmem:[#allocation5 + $0x70] sm:$0xff] %v421_v22 }
 0x1fe   :  { %488 = vst [vmem:[#allocation5 + $0x78] sm:$0xff] %v423_v24  ;;  %v426_v25 = vpop.f32.mrb[12].mxu1 }
 0x1ff   :  { %v427_v26 = vadd.f32 %v426_v25, %v938_v55  ;;  %v428_v27 = vpop.f32.mrb[13].mxu1 }
 0x200   :  { %v429_v28 = vadd.f32 %v428_v27, %v940_v56 }
 0x201   :  { %489 = vst [vmem:[#allocation5 + $0x80] sm:$0xff] %v427_v26 }
 0x202   :  { %490 = vst [vmem:[#allocation5 + $0x88] sm:$0xff] %v429_v28  ;;  %v432_v29 = vpop.f32.mrb[14].mxu1 }
 0x203   :  { %v433_v30 = vadd.f32 %v432_v29, %v938_v55  ;;  %v434_v31 = vpop.f32.mrb[15].mxu1 }
 0x204   :  { %v435_v32 = vadd.f32 %v434_v31, %v940_v56 }
 0x205   :  { %491 = vst [vmem:[#allocation5 + $0x90] sm:$0xff] %v433_v30 }
 0x206   :  { %492 = vst [vmem:[#allocation5 + $0x98] sm:$0xff] %v435_v32  ;;  %v438_v33 = vpop.f32.mrb[16].mxu1 }
 0x207   :  { %v439_v34 = vadd.f32 %v438_v33, %v938_v55  ;;  %v440_v35 = vpop.f32.mrb[17].mxu1 }
 0x208   :  { %v441_v36 = vadd.f32 %v440_v35, %v940_v56 }
 0x209   :  { %493 = vst [vmem:[#allocation5 + $0xa0] sm:$0xff] %v439_v34 }
 0x20a   :  { %494 = vst [vmem:[#allocation5 + $0xa8] sm:$0xff] %v441_v36  ;;  %v444_v37 = vpop.f32.mrb[18].mxu1 }
 0x20b   :  { %v445_v38 = vadd.f32 %v444_v37, %v938_v55  ;;  %v446_v39 = vpop.f32.mrb[19].mxu1 }
 0x20c   :  { %v447_v40 = vadd.f32 %v446_v39, %v940_v56 }
 0x20d   :  { %495 = vst [vmem:[#allocation5 + $0xb0] sm:$0xff] %v445_v38 }
 0x20e   :  { %496 = vst [vmem:[#allocation5 + $0xb8] sm:$0xff] %v447_v40  ;;  %v450_v41 = vpop.f32.mrb[20].mxu1 }
 0x20f   :  { %v451_v42 = vadd.f32 %v450_v41, %v938_v55  ;;  %v452_v43 = vpop.f32.mrb[21].mxu1 }
 0x210   :  { %v453_v44 = vadd.f32 %v452_v43, %v940_v56 }
 0x211   :  { %497 = vst [vmem:[#allocation5 + $0xc0] sm:$0xff] %v451_v42 }
 0x212   :  { %498 = vst [vmem:[#allocation5 + $0xc8] sm:$0xff] %v453_v44  ;;  %v456_v45 = vpop.f32.mrb[22].mxu1 }
 0x213   :  { %v457_v46 = vadd.f32 %v456_v45, %v938_v55  ;;  %v458_v47 = vpop.f32.mrb[23].mxu1 }
 0x214   :  { %v459_v48 = vadd.f32 %v458_v47, %v940_v56 }
 0x215   :  { %499 = vst [vmem:[#allocation5 + $0xd0] sm:$0xff] %v457_v46 }
 0x216   :  { %500 = vst [vmem:[#allocation5 + $0xd8] sm:$0xff] %v459_v48  ;;  %v462_v49 = vpop.f32.mrb[24].mxu1 }
 0x217   :  { %v463_v50 = vadd.f32 %v462_v49, %v938_v55  ;;  %v464_v51 = vpop.f32.mrb[25].mxu1 }
 0x218   :  { %v465_v52 = vadd.f32 %v464_v51, %v940_v56 }
 0x219   :  { %501 = vst [vmem:[#allocation5 + $0xe0] sm:$0xff] %v463_v50 }
 0x21a   :  { %502 = vst [vmem:[#allocation5 + $0xe8] sm:$0xff] %v465_v52  ;;  %v468_v53 = vpop.f32.mrb[26].mxu1 }
 0x21b   :  { %v469_v54 = vadd.f32 %v468_v53, %v938_v55  ;;  %v470_v57 = vpop.f32.mrb[27].mxu1 }
 0x21c   :  { %v471_v58 = vadd.f32 %v470_v57, %v940_v56 }
 0x21d   :  { %503 = vst [vmem:[#allocation5 + $0xf0] sm:$0x1f] %v469_v54 }
 0x21e   :  { %504 = vst [vmem:[#allocation5 + $0xf8] sm:$0x1f] %v471_v58 }
 0x21f   :  { %721 = shalt.err (!%p718_p12)
}
 0x220   :  { %s722_s26 = scalar_lea.hbm %s994_s5, 4096 }
 0x221   :  { %p723_p13 = scmp.ne.s32.totalorder %s994_s5, %s722_s26  ;;  %p726_p0 = scmp.lt.u32.totalorder %s722_s26, %s994_s5 }
 0x223   :  { %p728_p1 = pnand %p726_p0, %p723_p13 }
 0x225   :  { %731 = shalt.err (!%p728_p1)
}
 0x226   :  { %516 = dma.vmem_to_hbm [thread:$0]  %s511_s22, 4096, %s994_s5, [#allocation4], %s737_s28, %s737_s28, %s738_s29  }
 0x227   :  { %734 = dma.done.wait [#allocation4], 4096  }
 0x228   :  { %735 = vsyncadd [#allocation4], 4294963200 }
 0x229   :  { %520 = vsyncpa [#allocation3], 1 }
 0x22a   :  { %521 = vsyncpa [#allocation4], 1 }

</bundles_post_ra>
